<compile_context>
chip_gen: v7x
topology: tpu7x:2x2x1
jax: 0.10.0
libtpu: 0.0.40
codegen_flags: <defaults>
</compile_context>

<pallas_src>
import functools
import math

import jax
import jax.numpy as jnp
from jax.experimental import pallas as pl
from jax.experimental.pallas import tpu as pltpu

_NEG_INF = -1e30  # finite large-negative mask value; exp(_NEG_INF - m) == 0.0 in f32


def _head_kernel(x_ref, w_ref, o_ref, *, scale, hp):
    # x_ref: (1, T, C) block for one batch element; w_ref: (C, 3*Hp) fused [K|Q|V] weights.
    x = x_ref[0]          # (T, C)
    w = w_ref[...]        # (C, 3*Hp)

    # One fused projection matmul for K, Q, V (single MXU push/pop).
    qkv = jnp.dot(x, w, preferred_element_type=jnp.float32)   # (T, 3*Hp)
    t = qkv.shape[0]
    k = qkv[:, 0 * hp:1 * hp]    # (T, Hp)   tile-aligned slices (Hp % 128 == 0)
    q = qkv[:, 1 * hp:2 * hp]    # (T, Hp)
    v = qkv[:, 2 * hp:3 * hp]    # (T, Hp)

    # weights = (k @ q^T) * C**0.5  — contract over the head dim without materializing q^T.
    # Zero-padded head columns contribute nothing to the contraction.
    s = jax.lax.dot_general(
        k, q, (((1,), (1,)), ((), ())), preferred_element_type=jnp.float32
    ) * scale                                                   # (T, T)

    # Causal mask generated in-kernel: tril[i, j] == 0  <=>  i < j.
    row = jax.lax.broadcasted_iota(jnp.int32, (t, t), 0)
    col = jax.lax.broadcasted_iota(jnp.int32, (t, t), 1)
    s = jnp.where(row < col, _NEG_INF, s)

    # softmax over torch dim=1  ->  axis=0 of this per-batch (T, T) slice.
    m = jnp.max(s, axis=0, keepdims=True)
    e = jnp.exp(s - m)
    denom = jnp.sum(e, axis=0, keepdims=True)
    w_att = e * pl.reciprocal(denom, approx=False)

    # output = weights @ v  — (T, Hp), lane-dense (Hp == 128*k) unmasked store.
    o_ref[0] = jnp.dot(w_att, v, preferred_element_type=jnp.float32).astype(o_ref.dtype)


def head_forward(x, w_key, w_query, w_value):
    """x: (B, T, C) f32. w_*: (head_size, n_embd) like nn.Linear.weight (no bias)."""
    B, T, C = x.shape
    H = w_key.shape[0]
    scale = float(C) ** 0.5

    # Pad head dim so matmul N and the output store are multiples of 128 lanes.
    Hp = ((H + 127) // 128) * 128

    def _prep(w):  # (H, C) -> (C, Hp), pre-transposed + zero-padded along the head axis.
        wt = w.T.astype(jnp.float32)                      # (C, H)
        return jnp.pad(wt, ((0, 0), (0, Hp - H)))

    # Fused [K | Q | V] weight, each block Hp wide -> in-kernel slices are tile-aligned.
    w_fused = jnp.concatenate([_prep(w_key), _prep(w_query), _prep(w_value)], axis=1)

    kernel = functools.partial(_head_kernel, scale=scale, hp=Hp)

    out_padded = pl.pallas_call(
        kernel,
        out_shape=jax.ShapeDtypeStruct((B, T, Hp), jnp.float32),
        grid_spec=pltpu.PrefetchScalarGridSpec(
            num_scalar_prefetch=0,
            grid=(B,),
            in_specs=[
                pl.BlockSpec((1, T, C), lambda b: (b, 0, 0)),        # x, one batch/step
                pl.BlockSpec((C, 3 * Hp), lambda b: (0, 0)),         # fused QKV weights
            ],
            out_specs=pl.BlockSpec((1, T, Hp), lambda b: (b, 0, 0)),
        ),
        compiler_params=pltpu.CompilerParams(
            dimension_semantics=("parallel",),   # batch axis shards across TensorCores
        ),
    )(x.astype(jnp.float32), w_fused)

    # Drop the zero-padded head columns (layout plumbing only).
    return out_padded[:, :, :H]


def head_reference(x, w_key, w_query, w_value, tril):
    """Pure-JAX reference mirroring the PyTorch forward exactly."""
    B, T, C = x.shape
    k = x @ w_key.T
    q = x @ w_query.T
    v = x @ w_value.T
    weights = k @ jnp.swapaxes(q, -2, -1) * (float(C) ** 0.5)
    weights = jnp.where(tril[None, :, :] == 0.0, -jnp.inf, weights)
    weights = jax.nn.softmax(weights, axis=1)   # torch dim=1
    return weights @ v


if __name__ == "__main__":
    # Small shapes consistent with the module: block_size == T (required for the
    # reference masked_fill to broadcast).
    B = 2
    block_size = T = 8
    n_embd = C = 32
    head_size = H = 16
    dropout = 0.1  # identity in eval mode

    key = jax.random.PRNGKey(0)
    kx, kk, kq, kv = jax.random.split(key, 4)

    x = jax.random.normal(kx, (B, T, C), dtype=jnp.float32)

    # Deterministic parameter init, nn.Linear-like uniform(-1/sqrt(in), 1/sqrt(in)).
    bound = 1.0 / math.sqrt(n_embd)
    w_key_p = jax.random.uniform(kk, (head_size, n_embd), jnp.float32, -bound, bound)
    w_query_p = jax.random.uniform(kq, (head_size, n_embd), jnp.float32, -bound, bound)
    w_value_p = jax.random.uniform(kv, (head_size, n_embd), jnp.float32, -bound, bound)

    tril = jnp.tril(jnp.ones((block_size, block_size), dtype=jnp.float32))

    out = head_forward(x, w_key_p, w_query_p, w_value_p)
    out = jax.block_until_ready(out)

    ref = head_reference(x, w_key_p, w_query_p, w_value_p, tril)
    assert out.shape == (B, T, H), out.shape
    assert jnp.allclose(out, ref, atol=1e-5, rtol=1e-5), float(jnp.max(jnp.abs(out - ref)))

    print("KERNEL_OK")
</pallas_src>

<mosaic_0001>
module attributes {stable_mosaic.version = 11 : i64} {
  func.func @_head_kernel(%arg0: i32, %arg1: memref<1x8x32xf32, #tpu.memory_space<vmem>>, %arg2: memref<32x384xf32, #tpu.memory_space<vmem>>, %arg3: memref<1x8x128xf32, #tpu.memory_space<vmem>>) attributes {dimension_semantics = [#tpu.dimension_semantics<parallel>], iteration_bounds = array<i64: 2>, scalar_prefetch = 0 : i64, scratch_operands = 0 : i64, tpu.core_type = #tpu.core_type<tc>, window_params = [{transform_indices = @transform_0, window_bounds = array<i64: 1, 8, 32>}, {pipeline_mode = #tpu.pipeline_mode<synchronous>, transform_indices = @transform_1, window_bounds = array<i64: 32, 384>}, {transform_indices = @transform_2, window_bounds = array<i64: 1, 8, 128>}]} {
    %c0 = arith.constant 0 : index
    %c0_0 = arith.constant 0 : index
    %c0_1 = arith.constant 0 : index
    %0 = vector.load %arg1[%c0, %c0_0, %c0_1] : memref<1x8x32xf32, #tpu.memory_space<vmem>>, vector<1x8x32xf32>
    %1 = vector.shape_cast %0 : vector<1x8x32xf32> to vector<8x32xf32>
    %c0_2 = arith.constant 0 : index
    %c0_3 = arith.constant 0 : index
    %2 = vector.load %arg2[%c0_2, %c0_3] : memref<32x384xf32, #tpu.memory_space<vmem>>, vector<32x384xf32>
    %cst = arith.constant dense<0.000000e+00> : vector<8x384xf32>
    %3 = tpu.matmul %1, %2, %cst {dimension_numbers = #tpu.dot_dimension_numbers<[1], [0], [0], [1], [0, 0, 1, 1], [], []>} : vector<8x32xf32>, vector<32x384xf32>, vector<8x384xf32> -> vector<8x384xf32>
    %4 = vector.extract_strided_slice %3 {offsets = [0, 0], sizes = [8, 128], strides = [1, 1]} : vector<8x384xf32> to vector<8x128xf32>
    %5 = vector.extract_strided_slice %3 {offsets = [0, 128], sizes = [8, 128], strides = [1, 1]} : vector<8x384xf32> to vector<8x128xf32>
    %6 = vector.extract_strided_slice %3 {offsets = [0, 256], sizes = [8, 128], strides = [1, 1]} : vector<8x384xf32> to vector<8x128xf32>
    %cst_4 = arith.constant dense<0.000000e+00> : vector<8x8xf32>
    %7 = tpu.matmul %4, %5, %cst_4 {dimension_numbers = #tpu.dot_dimension_numbers<[1], [1], [0], [0], [0, 0, 1, 0], [], []>} : vector<8x128xf32>, vector<8x128xf32>, vector<8x8xf32> -> vector<8x8xf32>
    %cst_5 = arith.constant 5.65685415 : f32
    %8 = vector.broadcast %cst_5 : f32 to vector<8x8xf32>
    %9 = arith.mulf %7, %8 : vector<8x8xf32>
    %10 = tpu.iota {dimensions = array<i32: 0>} : vector<8x8xi32>
    %11 = tpu.iota {dimensions = array<i32: 1>} : vector<8x8xi32>
    %12 = arith.cmpi slt, %10, %11 : vector<8x8xi32>
    %cst_6 = arith.constant -1.000000e+30 : f32
    %13 = vector.broadcast %cst_6 : f32 to vector<8x8xf32>
    %14 = arith.select %12, %13, %9 : vector<8x8xi1>, vector<8x8xf32>
    %cst_7 = arith.constant dense<0xFF800000> : vector<8xf32>
    %15 = vector.multi_reduction <maximumf>, %14, %cst_7 [0] : vector<8x8xf32> to vector<8xf32>
    %16 = vector.shape_cast %15 : vector<8xf32> to vector<1x8xf32>
    %17 = vector.broadcast %16 : vector<1x8xf32> to vector<8x8xf32>
    %18 = arith.subf %14, %17 : vector<8x8xf32>
    %19 = math.exp %18 : vector<8x8xf32>
    %cst_8 = arith.constant dense<0.000000e+00> : vector<8xf32>
    %20 = vector.multi_reduction <add>, %19, %cst_8 [0] : vector<8x8xf32> to vector<8xf32>
    %21 = vector.shape_cast %20 : vector<8xf32> to vector<1x8xf32>
    %22 = tpu.reciprocal %21 : vector<1x8xf32> -> vector<1x8xf32>
    %23 = vector.broadcast %22 : vector<1x8xf32> to vector<8x8xf32>
    %24 = arith.mulf %19, %23 : vector<8x8xf32>
    %cst_9 = arith.constant dense<0.000000e+00> : vector<8x128xf32>
    %25 = tpu.matmul %24, %6, %cst_9 {dimension_numbers = #tpu.dot_dimension_numbers<[1], [0], [0], [1], [0, 0, 1, 1], [], []>} : vector<8x8xf32>, vector<8x128xf32>, vector<8x128xf32> -> vector<8x128xf32>
    %c0_10 = arith.constant 0 : index
    %c0_11 = arith.constant 0 : index
    %c0_12 = arith.constant 0 : index
    %26 = vector.load %arg3[%c0_10, %c0_11, %c0_12] : memref<1x8x128xf32, #tpu.memory_space<vmem>>, vector<1x8x128xf32>
    %27 = vector.shape_cast %26 : vector<1x8x128xf32> to vector<8x128xf32>
    %28 = vector.shape_cast %25 : vector<8x128xf32> to vector<1x8x128xf32>
    tpu.vector_store %arg3[%c0_10, %c0_11, %c0_12], %28 {strides = array<i32>} : memref<1x8x128xf32, #tpu.memory_space<vmem>>, vector<1x8x128xf32>,
    return
  }
  func.func @transform_0(%arg0: i32) -> (i32, i32, i32) {
    %c0_i32 = arith.constant 0 : i32
    %c0_i32_0 = arith.constant 0 : i32
    %c0_i32_1 = arith.constant 0 : i32
    return %arg0, %c0_i32, %c0_i32_0 : i32, i32, i32
  }
  func.func @transform_1(%arg0: i32) -> (i32, i32) {
    %c0_i32 = arith.constant 0 : i32
    %c0_i32_0 = arith.constant 0 : i32
    %c0_i32_1 = arith.constant 0 : i32
    return %c0_i32, %c0_i32_0 : i32, i32
  }
  func.func @transform_2(%arg0: i32) -> (i32, i32, i32) {
    %c0_i32 = arith.constant 0 : i32
    %c0_i32_0 = arith.constant 0 : i32
    %c0_i32_1 = arith.constant 0 : i32
    return %arg0, %c0_i32, %c0_i32_0 : i32, i32, i32
  }
}

</mosaic_0001>

<bundles_post_ra>
// kernel: tpu_custom_call.1
= control target key start
LH: loop header
LB: loop body
LE: loop exit
PB: predicated region body
PF: predicated region fallthrough
CT: control target
= control target key end

     0   :  { %7 = vsyncpa [#allocation3], 0  ;;  %s1085_s0 = inlined_call_operand.hbm [shape: f32[2,8,32], index: 0, kind: input, shape index: {}]   ;;  %s1086_s1 = inlined_call_operand.hbm [shape: f32[32,384], index: 1, kind: input, shape index: {}]   ;;  %s1087_s2 = inlined_call_operand.hbm [shape: f32[2,8,128], index: 2, kind: output, shape index: {}]  }
   0x1   :  { %9 = vsyncpa [#allocation3 + $0x1], 0 }
   0x2   :  { %10 = vsyncpa [#allocation6], 0 }
   0x3   :  { %11 = vsyncpa [#allocation4], 0 }
   0x4   :  { %13 = vsyncpa [#allocation4 + $0x1], 0  ;;  %s877_s9 = smov 0   ;;  %s879_s10 = smov 0  }
   0x5   :  { %s881_s11 = smov 0   ;;  %s883_s12 = smov 0  }
   0x6 LB: > { %s898_s13 = sadd.s32 4294967295, %s852_s12   ;;  %s597_s14 = sadd.s32 4294967294, %s852_s12   ;;  %s852_s12 = sphi %s883_s12, %s1107_s12   ;;  %s848_s11 = sphi %s881_s11, %s1106_s11   ;;  %s844_s10 = sphi %s879_s10, %s1105_s10   ;;  %s840_s9 = sphi %s877_s9, %s1104_s9  }
   0x7   : > { %p39_p0 = scmp.ne.s32.totalorder %s844_s10, %s840_s9  ;;  %p1088_p1 = scmp.eq.s32.totalorder %s898_s13, 0 }
   0x8   : > { %p90_p3 = scmp.eq.s32.totalorder %s597_s14, 1  ;;  %p598_p5 = scmp.ge.s32.totalorder %s852_s12, 1 }
   0x9   : > { %p907_p4 = por %p1088_p1, %p39_p0  ;;  %p97_p7 = scmp.lt.s32.totalorder %s852_s12, 3 }
   0xa   : > { %p912_p6 = por %p90_p3, %p39_p0  ;;  %s854_s18 = smov [#allocation5]  }
   0xb   : > { %s1091_s15 = scalar_select %p907_p4, 1, 0 }
   0xc   : > { %s1092_s16 = scalar_select %p912_p6, 1, 0 }
   0xd   : > { %p917_p8 = pnand %p598_p5, %p97_p7  ;;  %s109_s19 = sshll.u32 %s854_s18, 4  ;;  %s921_s19 = int_to_ptr.vmem [resolvable:$true] %s109_s19 }
   0xe   : > { %s933_s21 = sadd.s32 1, %s852_s12   ;;  %s26_s22 = sadd.s32 1, %s848_s11 }
   0xf   : > { %s1093_s17 = scalar_select %p917_p8, 1, 0 }
  0x10   : > { %p666_p9 = pneg %p917_p8  ;;  %s23_s23 = ssub.s32 %s852_s12, %s933_s21 }
  0x11   : > { %s724_s26 = scalar_lea.hbm %s1086_s1, 1536 }
  0x12   : > { %p928_p11 = pnand %p666_p9, %p1088_p1  ;;  %p725_p12 = scmp.ne.s32.totalorder %s1086_s1, %s724_s26 }
  0x13   : > { %p731_p5 = scmp.lt.u32.totalorder %s724_s26, %s1086_s1 }
  0x14   : > { %p726_p13 = pneg %p928_p11 }
  0x16   : > { %p727_p0 = pnand %p726_p13, %p725_p12 }
  0x18   : > { %p728_p3 = pneg %p727_p0 }
  0x1a   : > { %p733_p7 = pnand %p731_p5, %p728_p3 }
  0x1c   : > { %736 = shalt.err (!%p733_p7)
}
  0x1d   : > { %s737_s3 = scalar_lea.vmem %s921_s19, 1536  ;;  %p745_p2 = scmp.lt.s32.totalorder %s921_s19, %s921_s19 }
  0x1e   : > { %p738_p9 = scmp.ne.s32.totalorder %s921_s19, %s737_s3  ;;  %p746_p6 = scmp.lt.s32.totalorder %s737_s3, %s737_s3 }
  0x20   : > { %p740_p10 = pnand %p738_p9, %p726_p13  ;;  %p747_p4 = por %p746_p6, %p745_p2 }
  0x22   : > { %p741_p1 = pneg %p740_p10 }
  0x24   : > { %p748_p8 = pnand %p747_p4, %p741_p1 }
  0x26   : > { %751 = shalt.err (!%p748_p8)
}
  0x27   : > { %s855_s4 = smov 384   ;;  %s856_s5 = smov 24  }
  0x28   : > { %669 = dma.hbm_to_vmem [thread:$0]  (!%p928_p11), %s1086_s1, 1536, %s921_s19, [#allocation6], %s855_s4, %s855_s4, %s856_s5  }
  0x29   : > { %p24_p2 = scmp.eq.s32.totalorder %s23_s23, 0  ;;  %p33_p1 = scmp.ne.s32.totalorder %s848_s11, %s844_s10 }
  0x2a   : > { %p34_p4 = scmp.eq.s32.totalorder %s852_s12, 0  ;;  %p679_p6 = scmp.lt.s32.totalorder %s852_s12, 2 }
  0x2b   : > { %s964_s8 = scalar_select %p24_p2, %s848_s11, %s26_s22  }
  0x2c   : > { %p35_p8 = por %p34_p4, %p33_p1  ;;  %p1095_p10 = scmp.eq.s32.totalorder %s898_s13, 1 }
  0x2d   : > { %s123_s18 = sand.u32 1, %s848_s11   ;;  %s602_s24 = sshll.u32 %s852_s12, 7 }
  0x2e   : > { %p968_p12 = por %p1095_p10, %p33_p1  ;;  %s601_s25 = sshll.u32 %s123_s18, 3 }
  0x2f   : > { %s977_s27 = scalar_lea.hbm %s1085_s0, %s602_s24  ;;  %s127_s19 = scalar_lea.vmem [#allocation2], %s601_s25 }
  0x30   : > { %s134_s22 = sshll.u32 %s127_s19, 4  ;;  %p979_p11 = pnand %p679_p6, %p35_p8  ;;  %s983_s22 = int_to_ptr.vmem [resolvable:$true] %s134_s22 }
  0x31   : > { %s124_s28 = scalar_lea.sflag [#allocation3], %s123_s18  ;;  %s752_s29 = scalar_lea.hbm %s977_s27, 128 }
  0x32   : > { %p753_p13 = scmp.ne.s32.totalorder %s977_s27, %s752_s29  ;;  %p754_p0 = pneg %p979_p11 }
  0x33   : > { %s757_s4 = scalar_lea.hbm %s1085_s0, 256  ;;  %p758_p7 = scmp.lt.u32.totalorder %s977_s27, %s1085_s0 }
  0x34   : > { %p755_p3 = pnand %p754_p0, %p753_p13  ;;  %p759_p9 = scmp.lt.u32.totalorder %s757_s4, %s752_s29 }
  0x35   : > { %p761_p1 = scmp.lt.u32.totalorder %s752_s29, %s977_s27 }
  0x36   : > { %p756_p5 = pneg %p755_p3  ;;  %p760_p2 = por %p759_p9, %p758_p7 }
  0x38   : > { %p762_p4 = por %p761_p1, %p760_p2 }
  0x3a   : > { %p763_p6 = pnand %p762_p4, %p756_p5 }
  0x3c   : > { %766 = shalt.err (!%p763_p6)
}
  0x3d   : > { %s767_s7 = scalar_lea.vmem %s983_s22, 128  ;;  %s857_s18 = smov [#allocation2]  }
  0x3e   : > { %p768_p8 = scmp.ne.s32.totalorder %s983_s22, %s767_s7  ;;  %s772_s24 = sshll.u32 %s857_s18, 4  ;;  %s773_s24 = int_to_ptr.vmem [resolvable:$false] %s772_s24 }
  0x3f   : > { %s774_s25 = scalar_lea.vmem %s773_s24, 256  ;;  %p775_p3 = scmp.lt.s32.totalorder %s983_s22, %s773_s24 }
  0x40   : > { %p770_p10 = pnand %p768_p8, %p754_p0  ;;  %p776_p7 = scmp.lt.s32.totalorder %s774_s25, %s767_s7 }
  0x42   : > { %p771_p13 = pneg %p770_p10  ;;  %p777_p9 = por %p776_p7, %p775_p3 }
  0x44   : > { %p778_p2 = pnand %p777_p9, %p771_p13 }
  0x46   : > { %781 = shalt.err (!%p778_p2)
}
  0x47   : > { %673 = dma.hbm_to_vmem [thread:$0]  (!%p979_p11), %s977_s27, 128, %s983_s22, %s124_s28  }
  0x48   : > { %p1098_p5 = scmp.ne.s32.totalorder %s1093_s17, 0 }
  0x49   : > { %s1013_s20 = sand.u32 (!%p1098_p5), 1, %s844_s10   ;;  %p1099_p0 = scmp.ne.s32.totalorder (!%p1098_p5), %s1091_s15, 0 }
  0x4a   : > { %143 = sbr.rel (%p1098_p5) target bundleno = 807 (0x327), region = 28  ;;  %s604_s26 = sshll.u32 (!%p1098_p5), %s1013_s20, 3 }
  0x4b   : > { %s146_s19 = scalar_lea.sflag (!%p1098_p5), [#allocation3], %s1013_s20  ;;  %s149_s29 = scalar_lea.vmem (!%p1098_p5), [#allocation2], %s604_s26 }
  0x51   : > { %827 = dma.done.wait (%p1099_p0), %s146_s19, 128  }
  0x52   : > { %829 = vsyncadd (%p1099_p0), %s146_s19, 4294967168  ;;  %p1100_p11 = scmp.eq.s32.totalorder %s898_s13, 0 }
  0x54   : > { %831 = dma.done.wait (%p1100_p11), [#allocation6], 1536   ;;  %p1101_p1 = pmov %p1100_p11 }
  0x55   : > { %v858_v0 = vmov 0.0   ;;  %v176_v1 = vld [vmem:[#allocation5 + $0x8] sm:$0xff]  ;;  %v179_v2 = vld [vmem:[#allocation5 + $0x20] sm:$0xff]  ;;  %v178_v5 = vld [vmem:[#allocation5 + $0x18] sm:$0xff]  ;;  %vm187_vm0 = vcmask 261120   ;;  %vm859_vm1 = vmmov 0   ;;  %v403_v25 = vlaneseq }
  0x56   : > { %833 = vsyncadd (%p1101_p1), [#allocation6], 4294965760  ;;  %255 = vmatprep.mubr.f32.mxu0 %v858_v0  ;;  %v175_v3 = vld [vmem:[#allocation5] sm:$0xff]  ;;  %v644_v4 = vpack.c.bf16 %v179_v2, %v176_v1  ;;  %v182_v6 = vld [vmem:[#allocation5 + $0x38] sm:$0xff]  ;;  %631 = vmatprep.mubr.msk.f32.mxu1 %vm859_vm1, %v858_v0  ;;  %v860_v17 = vmov 0.0|0.0   ;;  %vm409_vm3 = vcmask 64512  }
  0x57   : > { %v185_v7 = vld [vmem:[#allocation5 + $0x50] sm:$0xff]  ;;  %v646_v8 = vpack.c.bf16 %v178_v5, %v175_v3  ;;  %v184_v11 = vld [vmem:[#allocation5 + $0x48] sm:$0xff]  ;;  %v183_v16 = vld [vmem:[#allocation5 + $0x40] sm:$0xff]  ;;  %652 = vmatprep.subr.bf16.mxu1 %v860_v17  ;;  %v404_v26 = vshrl.u32 %v403_v25, 7  ;;  %v406_v27 = vand.u32 127, %v403_v25  ;;  %s173_s15 = scalar_lea.vmem [#allocation7], %s604_s26 }
  0x58   : > { %v648_v9 = vpack.c.bf16 %v185_v7, %v182_v6  ;;  %v181_v10 = vld [vmem:[#allocation5 + $0x30] sm:$0xff]  ;;  %645 = vmatprep.subr.bf16.mxu0 %v644_v4  ;;  %v180_v15 = vld [vmem:[#allocation5 + $0x28] sm:$0xff]  ;;  %v186_v19 = vld [vmem:[#allocation5 + $0x58] sm:$0xff]  ;;  %s517_s17 = sshll.u32 %s173_s15, 4  ;;  %s611_s27 = sshll.u32 %s898_s13, 7  ;;  %s1038_s17 = int_to_ptr.vmem [resolvable:$true] %s517_s17 }
  0x59   : > { %647 = vmatpush1.bf16.msra.mxu0 %v646_v8  ;;  %v650_v12 = vpack.c.bf16 %v184_v11, %v181_v10  ;;  %v174_v13 = vld [vmem:[%s149_s29] sm:$0xff]  ;;  %v656_v20 = vpack.c.bf16 %v186_v19, %v183_v16  ;;  %vm407_vm2 = vcmp.lt.s32.totalorder %v404_v26, %v406_v27  ;;  %s1043_s28 = scalar_lea.hbm %s1087_s2, %s611_s27  ;;  %s504_s30 = scalar_lea.sflag [#allocation4], %s1013_s20 }
  0x5a   : > { %649 = vmatprep.subr.bf16.mxu0 %v648_v9  ;;  %v177_v14 = vld [vmem:[#allocation5 + $0x10] sm:$0xff]  ;;  %s782_s3 = scalar_lea.vmem %s1038_s17, 128  ;;  %s861_s13 = smov [#allocation7]  }
  0x5b   : > { %v653_v18 = vpack.c.bf16 %v180_v15, %v177_v14  ;;  %p783_p4 = scmp.ne.s32.totalorder %s1038_s17, %s782_s3  ;;  %s786_s4 = sshll.u32 %s861_s13, 4  ;;  %s787_s4 = int_to_ptr.vmem [resolvable:$false] %s786_s4 }
  0x5c   : > { %s788_s5 = scalar_lea.vmem %s787_s4, 256  ;;  %p789_p10 = scmp.lt.s32.totalorder %s1038_s17, %s787_s4 }
  0x5d   : > { %651 = vmatpush1.bf16.msra.mxu0 %v650_v12  ;;  %654 = vmatpush3.bf16.msra.mxu1 %v653_v18  ;;  %p784_p6 = pnand %p783_p4, %p968_p12  ;;  %p790_p13 = scmp.lt.s32.totalorder %s788_s5, %s782_s3 }
  0x5e   : > { %634 = vmatprep.subr.mxu0 %v858_v0  ;;  %655 = vmatprep.subr.bf16.mxu1 %v860_v17 }
  0x5f   : > { %p785_p8 = pneg %p784_p6  ;;  %p791_p3 = por %p790_p13, %p789_p10 }
  0x60   : > { %607 = vmatmul.mubr.msk.f32.vlgmr.msra.gmra.mrb[0].mxu0 %vm187_vm0, %v174_v13 }
  0x61   : > { %636 = vmatprep.mubr.msk.f32.mxu0 %vm859_vm1, %v858_v0  ;;  %657 = vmatpush3.bf16.msra.mxu1 %v656_v20  ;;  %p792_p7 = pnand %p791_p3, %p785_p8 }
  0x62   : > { %639 = vmatprep.subr.mxu1 %v858_v0 }
  0x64   : > { %632 = vmatmul.mubr.msk.f32.vlgmr.msra.gmra.mrb[0].mxu1 %vm187_vm0, %v174_v13 }
  0x65   : > { %641 = vmatprep.mubr.msk.f32.mxu1 %vm859_vm1, %v858_v0 }
 0x133   : > { %v257_v21 = vpop.f32.mrb[0].mxu0 }
 0x134   : > { %v259_v22 = vpop.f32.mrb[1].mxu0 }
 0x135   : > { %635 = vmatpush3.xpose.msra.mxu0 %v259_v22 }
 0x137   : > { %v328_v23 = vpop.f32.mrb[0].mxu1 }
 0x138   : > { %637 = vmatmul.mubr.f32.vlgmr.msra.gmra.mrb[2].mxu0 %v257_v21  ;;  %v633_v24 = vpop.f32.mrb[1].mxu1  ;;  %640 = vmatpush3.msra.mxu1 %v328_v23 }
 0x20b   : > { %v398_v28 = vpop.f32.mrb[2].mxu0 }
 0x20c   : > { %v402_v29 = vmul.f32 5.656854, %v398_v28  ;;  %v638_v30 = vpop.f32.mrb[3].mxu0 }
 0x20e   : > { %v408_v31 = vsel %vm407_vm2, -1e+30, %v402_v29 }
 0x20f   : > { %v410_v32 = vsel %vm409_vm3, %v408_v31, -inf }
 0x210   : > { %v411_v33 = vrot.slane %v410_v32, 4 }
 0x212   : > { %v412_v34 = vmax.f32 %v410_v32, %v411_v33 }
 0x214   : > { %v413_v35 = vrot.slane %v412_v34, 2 }
 0x216   : > { %v414_v36 = vmax.f32 %v412_v34, %v413_v35 }
 0x218   : > { %v415_v37 = vrot.slane %v414_v36, 1 }
 0x21a   : > { %v416_v38 = vmax.f32 %v414_v36, %v415_v37 }
 0x21c   : > { %v417_v39 = vsub.f32 %v408_v31, %v416_v38 }
 0x21e   : > { %v418_v40 = vmul.f32 1.442695, %v417_v39 }
 0x220   : > { %720 = vpow2.f32 %v418_v40 }
 0x22a   : > { %v721_v41 = vpop.eup %720 }
 0x22b   : > { %v420_v42 = vsel %vm409_vm3, %v721_v41, 0.0 }
 0x22c   : > { %v421_v43 = vrot.slane %v420_v42, 4 }
 0x22e   : > { %v422_v44 = vadd.f32 %v421_v43, %v420_v42 }
 0x230   : > { %v423_v45 = vrot.slane %v422_v44, 2 }
 0x232   : > { %v424_v46 = vadd.f32 %v423_v45, %v422_v44 }
 0x234   : > { %v425_v47 = vrot.slane %v424_v46, 1 }
 0x236   : > { %v426_v48 = vadd.f32 %v425_v47, %v424_v46 }
 0x238   : > { %722 = vrcp.f32 %v426_v48 }
 0x242   : > { %v723_v49 = vpop.eup %722 }
 0x243   : > { %v428_v50 = vmul.f32 %v723_v49, %v721_v41 }
 0x245   : > { %642 = vmatmul.mubr.msk.f32.vlgmr.msra.gmra.mrb[2].mxu1 %vm409_vm3, %v428_v50 }
 0x318   : > { %v498_v51 = vpop.f32.mrb[2].mxu1 }
 0x319   : > { %502 = vst [vmem:[%s173_s15] sm:$0xff] %v498_v51  ;;  %v643_v52 = vpop.f32.mrb[3].mxu1 }
 0x31a   : > { %795 = shalt.err (!%p792_p7)
}
 0x31b   : > { %s796_s6 = scalar_lea.hbm %s1043_s28, 128  ;;  %s800_s24 = scalar_lea.hbm %s1087_s2, 256 }
 0x31c   : > { %p797_p9 = scmp.ne.s32.totalorder %s1043_s28, %s796_s6  ;;  %p801_p0 = scmp.lt.u32.totalorder %s1043_s28, %s1087_s2 }
 0x31d   : > { %p802_p11 = scmp.lt.u32.totalorder %s800_s24, %s796_s6  ;;  %p804_p4 = scmp.lt.u32.totalorder %s796_s6, %s1043_s28 }
 0x31e   : > { %p798_p2 = pnand %p797_p9, %p968_p12 }
 0x31f   : > { %p803_p1 = por %p802_p11, %p801_p0 }
 0x320   : > { %p799_p5 = pneg %p798_p2 }
 0x321   : > { %p805_p6 = por %p804_p4, %p803_p1 }
 0x323   : > { %p806_p8 = pnand %p805_p6, %p799_p5 }
 0x325   : > { %809 = shalt.err (!%p806_p8)
}
 0x326   : > { %664 = dma.vmem_to_hbm [thread:$0]  (%p968_p12), %s1038_s17, 128, %s1043_s28, %s504_s30  }
 0x327 PF: > { %s529_s26 = sand.u32 1, %s840_s9   ;;  %p1102_p10 = scmp.ne.s32.totalorder %s1092_s16, 0 }
 0x328   : > { %p1103_p13 = scmp.ge.s32.totalorder %s852_s12, 2  ;;  %s530_s19 = scalar_lea.sflag [#allocation4], %s529_s26 }
 0x32a   : > { %p675_p3 = pnand %p1103_p13, %p1102_p10 }
 0x32c   : > { %835 = dma.done.wait (!%p675_p3), %s530_s19, 128  }
 0x32d   : > { %837 = vsyncadd (!%p675_p3), %s530_s19, 4294967168  ;;  %p16_p7 = scmp.ge.s32.totalorder %s933_s21, 4   ;;  %s1104_s9 = smov %s844_s10 }
 0x32e   : > { %s1105_s10 = smov %s848_s11  ;;  %s1106_s11 = smov %s964_s8 }
 0x32f   : > { %s1107_s12 = smov %s933_s21  ;;  %18 = sbr.rel (!%p16_p7) target bundleno = 6 (0x6), region = 77 }
 0x336   :  { %535 = vsyncpa [#allocation3], 1 }
 0x337   :  { %537 = vsyncpa [#allocation3 + $0x1], 1 }
 0x338   :  { %538 = vsyncpa [#allocation6], 1 }
 0x339   :  { %539 = vsyncpa [#allocation4], 1 }
 0x33a   :  { %541 = vsyncpa [#allocation4 + $0x1], 1 }

</bundles_post_ra>
